<compile_context>
chip_gen: v6e
topology: v6e:2x2x1
jax: 0.10.0
libtpu: 0.0.40
codegen_flags: <defaults>
</compile_context>

<pallas_src>
import functools

import jax
import jax.numpy as jnp
import numpy as np
from jax.experimental import pallas as pl
from jax.experimental.pallas import tpu as pltpu


def _yolo_kernel(shift_ref, wh_ref, x_ref, o_ref, *, stride, ba_tile):
    """Decode a block of raw detector outputs and emit the transposed layout.

    shift_ref : VMEM (2, HW)           row 0 = x_shift, row 1 = y_shift (cells)
    wh_ref    : VMEM (ba_tile, 2, 1)   anchor (w, h) * 0.5 * stride per tile
    x_ref     : VMEM (ba_tile, n_ch, HW)   raw network outputs (lane-dense)
    o_ref     : VMEM (ba_tile, HW, n_ch)   decoded xyxy boxes (pixels) + scores
    """
    shift = shift_ref[...]                                    # (2, HW), hoisted

    # Static unroll over the (b, a) tiles in this block; each iteration's
    # temps are consumed by its own stores, keeping live ranges short.
    for t in range(ba_tile):
        # Box centers in pixels: (sigmoid(txy) + cell_shift) * stride.
        txy = jax.nn.sigmoid(x_ref[t, 0:2, :].astype(jnp.float32))   # (2, HW)
        ctr = (txy + shift) * stride                                  # (2, HW)

        # Half box size: 0.5 * exp(twh) * anchor * stride (0.5*stride pre-folded).
        half = jnp.exp(x_ref[t, 2:4, :].astype(jnp.float32)) * wh_ref[t]  # (2, HW)

        # xywh (center) -> xyxy, transposed to (HW, 2) on the XLU for the store.
        o_ref[t, :, 0:2] = jnp.swapaxes(ctr - half, 0, 1).astype(o_ref.dtype)
        o_ref[t, :, 2:4] = jnp.swapaxes(ctr + half, 0, 1).astype(o_ref.dtype)

        # Objectness + classes: sigmoid in the input dtype, streamed straight
        # to the store (no full-slab temp held across the box math).
        rest = jax.nn.sigmoid(x_ref[t, 4:, :])                    # (n_ch-4, HW)
        o_ref[t, :, 4:] = jnp.swapaxes(rest, 0, 1).astype(o_ref.dtype)


def _pick_ba_tile(num_tiles, tile_bytes, *, target_bytes=2 << 20, max_unroll=16):
    """Pick how many (b, a) tiles each grid step handles.

    Keeps the input block near ``target_bytes`` (sized for the strictest
    scoped-VMEM budget, v5e's 16 MiB default), bounds the in-kernel unroll,
    and prefers an even number of grid steps (v7x 2-TC balance) with >= 4
    steps so the DMA pipeline can fully overlap.
    """
    divisors = [d for d in range(1, num_tiles + 1) if num_tiles % d == 0]
    fits = [d for d in divisors if d * tile_bytes <= target_bytes and d <= max_unroll]
    if not fits:
        fits = [1]

    def n_steps(d):
        return num_tiles // d

    for ok in (
        lambda d: n_steps(d) >= 4 and n_steps(d) % 2 == 0,
        lambda d: n_steps(d) >= 2 and n_steps(d) % 2 == 0,
        lambda d: True,
    ):
        cand = [d for d in fits if ok(d)]
        if cand:
            return max(cand)
    return 1


def yolo_layer(outputs, masked_anchors, stride, num_classes):
    """JAX/Pallas equivalent of YOLOLayer.forward in eval mode.

    outputs        : (B, C, H, W), C = A * (5 + num_classes)
    masked_anchors : (A, 2) anchor sizes in input-image pixels (divided by
                     stride here, matching the in-place division in __init__)
    returns        : (B, A*H*W, 5 + num_classes), same dtype as `outputs`
    """
    B, C, H, W = outputs.shape
    n_ch = 5 + num_classes
    A = masked_anchors.shape[0]
    assert C == A * n_ch
    HW = H * W
    BA = B * A

    # Grid-cell shifts: computed once, identical for every (b, a) tile.
    col = jnp.arange(HW, dtype=jnp.int32)
    shifts = jnp.stack(
        [(col % W).astype(jnp.float32), (col // W).astype(jnp.float32)], axis=0
    )  # (2, HW)

    # Anchors / stride (matching torch __init__), pre-folded with the
    # 0.5 * stride factor of the xywh->xyxy step, tiled per (b, a) tile.
    wh_half = (masked_anchors.astype(jnp.float32) / stride) * (0.5 * float(stride))
    wh_half = jnp.tile(wh_half.reshape(1, A, 2, 1), (B, 1, 1, 1)).reshape(BA, 2, 1)

    # (B, A*n_ch, H, W) -> (B*A, n_ch, H*W): pure reshape, no data movement.
    x = outputs.reshape(BA, n_ch, HW)

    tile_bytes = n_ch * HW * x.dtype.itemsize
    ba_tile = _pick_ba_tile(BA, tile_bytes)
    grid = (BA // ba_tile,)

    kernel = functools.partial(_yolo_kernel, stride=float(stride), ba_tile=ba_tile)

    itemsize = x.dtype.itemsize
    cost = pl.CostEstimate(
        flops=int(8 * BA * n_ch * HW),
        transcendentals=int(BA * n_ch * HW),
        bytes_accessed=int(2 * BA * n_ch * HW * itemsize),
    )

    decoded = pl.pallas_call(
        kernel,
        out_shape=jax.ShapeDtypeStruct((BA, HW, n_ch), outputs.dtype),
        grid=grid,
        in_specs=[
            pl.BlockSpec((2, HW), lambda i: (0, 0)),                 # shifts (shared)
            pl.BlockSpec((ba_tile, 2, 1), lambda i: (i, 0, 0)),      # anchors
            pl.BlockSpec((ba_tile, n_ch, HW), lambda i: (i, 0, 0)),  # raw outputs
        ],
        out_specs=pl.BlockSpec((ba_tile, HW, n_ch), lambda i: (i, 0, 0)),
        compiler_params=pltpu.CompilerParams(
            dimension_semantics=("parallel",),
            vmem_limit_bytes=32 * 1024 * 1024,
        ),
        cost_estimate=cost,
    )(shifts, wh_half, x)

    # (BA, HW, n_ch) -> (B, A*H*W, n_ch): contiguous reshape only (no HBM pass).
    return decoded.reshape(B, A * HW, n_ch)


def yolo_layer_ref(outputs, masked_anchors, stride, num_classes):
    """Pure-JAX reference mirroring the torch code line by line."""
    B, C, H, W = outputs.shape
    n_ch = 5 + num_classes
    A = masked_anchors.shape[0]
    anchors = masked_anchors / stride

    x_shift = jnp.broadcast_to(jnp.arange(W).reshape(1, 1, 1, W), (B, A, H, W)).astype(outputs.dtype)
    y_shift = jnp.broadcast_to(jnp.arange(H).reshape(1, 1, H, 1), (B, A, H, W)).astype(outputs.dtype)
    w_anch = jnp.broadcast_to(anchors[:, 0].reshape(1, A, 1, 1), (B, A, H, W)).astype(outputs.dtype)
    h_anch = jnp.broadcast_to(anchors[:, 1].reshape(1, A, 1, 1), (B, A, H, W)).astype(outputs.dtype)

    o = outputs.reshape(B, A, n_ch, H, W).transpose(0, 1, 3, 4, 2)
    tx = jax.nn.sigmoid(o[..., 0]) + x_shift
    ty = jax.nn.sigmoid(o[..., 1]) + y_shift
    tw = jnp.exp(o[..., 2]) * w_anch
    th = jnp.exp(o[..., 3]) * h_anch
    rest = jax.nn.sigmoid(o[..., 4:])

    cx, cy, bw, bh = tx * stride, ty * stride, tw * stride, th * stride
    box = jnp.stack(
        [cx - bw / 2, cy - bh / 2, cx + bw / 2, cy + bh / 2], axis=-1
    )  # xywh (center) -> xyxy
    out = jnp.concatenate([box, rest], axis=-1)
    return out.reshape(B, -1, n_ch)


if __name__ == "__main__":
    # Small, consistent shapes: A=3 anchors, num_classes=3 -> n_ch=8, C=24.
    B, A, num_classes = 2, 3, 3
    n_ch = 5 + num_classes
    H = W = 16
    stride = 8.0

    key = jax.random.PRNGKey(0)
    k1, k2 = jax.random.split(key)
    outputs = jax.random.normal(k1, (B, A * n_ch, H, W), dtype=jnp.float32)
    masked_anchors = (
        jax.random.uniform(k2, (A, 2), dtype=jnp.float32) * 100.0 + 10.0
    )  # anchor sizes in image pixels

    got = jax.block_until_ready(yolo_layer(outputs, masked_anchors, stride, num_classes))
    want = yolo_layer_ref(outputs, masked_anchors, stride, num_classes)

    assert got.shape == (B, A * H * W, n_ch), got.shape
    np.testing.assert_allclose(np.asarray(got), np.asarray(want), rtol=1e-5, atol=1e-4)
    print("KERNEL_OK")
</pallas_src>

<mosaic_0001>
module attributes {stable_mosaic.version = 11 : i64} {
  func.func @_yolo_kernel(%arg0: i32, %arg1: memref<2x256xf32, #tpu.memory_space<vmem>>, %arg2: memref<1x2x1xf32, #tpu.memory_space<vmem>>, %arg3: memref<1x8x256xf32, #tpu.memory_space<vmem>>, %arg4: memref<1x256x8xf32, #tpu.memory_space<vmem>>) attributes {dimension_semantics = [#tpu.dimension_semantics<parallel>], iteration_bounds = array<i64: 6>, scalar_prefetch = 0 : i64, scratch_operands = 0 : i64, tpu.core_type = #tpu.core_type<tc>, window_params = [{pipeline_mode = #tpu.pipeline_mode<synchronous>, transform_indices = @transform_0, window_bounds = array<i64: 2, 256>}, {transform_indices = @transform_1, window_bounds = array<i64: 1, 2, 1>}, {transform_indices = @transform_2, window_bounds = array<i64: 1, 8, 256>}, {transform_indices = @transform_3, window_bounds = array<i64: 1, 256, 8>}]} {
    %c0 = arith.constant 0 : index
    %c0_0 = arith.constant 0 : index
    %0 = vector.load %arg1[%c0, %c0_0] : memref<2x256xf32, #tpu.memory_space<vmem>>, vector<2x256xf32>
    %c0_1 = arith.constant 0 : index
    %c0_2 = arith.constant 0 : index
    %c0_3 = arith.constant 0 : index
    %1 = vector.load %arg3[%c0_1, %c0_2, %c0_3] : memref<1x8x256xf32, #tpu.memory_space<vmem>>, vector<1x2x256xf32>
    %2 = vector.shape_cast %1 : vector<1x2x256xf32> to vector<2x256xf32>
    %3 = arith.negf %2 : vector<2x256xf32>
    %4 = math.exp %3 : vector<2x256xf32>
    %cst = arith.constant 1.000000e+00 : f32
    %5 = vector.broadcast %cst : f32 to vector<2x256xf32>
    %6 = arith.addf %5, %4 : vector<2x256xf32>
    %7 = arith.divf %5, %6 : vector<2x256xf32>
    %8 = arith.addf %7, %0 : vector<2x256xf32>
    %cst_4 = arith.constant 8.000000e+00 : f32
    %9 = vector.broadcast %cst_4 : f32 to vector<2x256xf32>
    %10 = arith.mulf %8, %9 : vector<2x256xf32>
    %c0_5 = arith.constant 0 : index
    %c2 = arith.constant 2 : index
    %c0_6 = arith.constant 0 : index
    %11 = vector.load %arg3[%c0_5, %c2, %c0_6] : memref<1x8x256xf32, #tpu.memory_space<vmem>>, vector<1x2x256xf32>
    %12 = vector.shape_cast %11 : vector<1x2x256xf32> to vector<2x256xf32>
    %13 = math.exp %12 : vector<2x256xf32>
    %c0_7 = arith.constant 0 : index
    %c0_8 = arith.constant 0 : index
    %c0_9 = arith.constant 0 : index
    %14 = vector.load %arg2[%c0_7, %c0_8, %c0_9] : memref<1x2x1xf32, #tpu.memory_space<vmem>>, vector<1x2x1xf32>
    %15 = vector.shape_cast %14 : vector<1x2x1xf32> to vector<2x1xf32>
    %16 = vector.broadcast %15 : vector<2x1xf32> to vector<2x256xf32>
    %17 = arith.mulf %13, %16 : vector<2x256xf32>
    %18 = arith.subf %10, %17 : vector<2x256xf32>
    %19 = tpu.transpose %18, [1, 0] : vector<2x256xf32> -> vector<256x2xf32>
    %c0_10 = arith.constant 0 : index
    %c0_11 = arith.constant 0 : index
    %c0_12 = arith.constant 0 : index
    %20 = vector.load %arg4[%c0_10, %c0_11, %c0_12] : memref<1x256x8xf32, #tpu.memory_space<vmem>>, vector<1x256x2xf32>
    %21 = vector.shape_cast %20 : vector<1x256x2xf32> to vector<256x2xf32>
    %22 = vector.shape_cast %19 : vector<256x2xf32> to vector<1x256x2xf32>
    tpu.vector_store %arg4[%c0_10, %c0_11, %c0_12], %22 {strides = array<i32>} : memref<1x256x8xf32, #tpu.memory_space<vmem>>, vector<1x256x2xf32>,
    %23 = arith.addf %10, %17 : vector<2x256xf32>
    %24 = tpu.transpose %23, [1, 0] : vector<2x256xf32> -> vector<256x2xf32>
    %c0_13 = arith.constant 0 : index
    %c0_14 = arith.constant 0 : index
    %c2_15 = arith.constant 2 : index
    %25 = vector.load %arg4[%c0_13, %c0_14, %c2_15] : memref<1x256x8xf32, #tpu.memory_space<vmem>>, vector<1x256x2xf32>
    %26 = vector.shape_cast %25 : vector<1x256x2xf32> to vector<256x2xf32>
    %27 = vector.shape_cast %24 : vector<256x2xf32> to vector<1x256x2xf32>
    tpu.vector_store %arg4[%c0_13, %c0_14, %c2_15], %27 {strides = array<i32>} : memref<1x256x8xf32, #tpu.memory_space<vmem>>, vector<1x256x2xf32>,
    %c0_16 = arith.constant 0 : index
    %c4 = arith.constant 4 : index
    %c0_17 = arith.constant 0 : index
    %28 = vector.load %arg3[%c0_16, %c4, %c0_17] : memref<1x8x256xf32, #tpu.memory_space<vmem>>, vector<1x4x256xf32>
    %29 = vector.shape_cast %28 : vector<1x4x256xf32> to vector<4x256xf32>
    %30 = arith.negf %29 : vector<4x256xf32>
    %31 = math.exp %30 : vector<4x256xf32>
    %cst_18 = arith.constant 1.000000e+00 : f32
    %32 = vector.broadcast %cst_18 : f32 to vector<4x256xf32>
    %33 = arith.addf %32, %31 : vector<4x256xf32>
    %34 = arith.divf %32, %33 : vector<4x256xf32>
    %35 = tpu.transpose %34, [1, 0] : vector<4x256xf32> -> vector<256x4xf32>
    %c0_19 = arith.constant 0 : index
    %c0_20 = arith.constant 0 : index
    %c4_21 = arith.constant 4 : index
    %36 = vector.load %arg4[%c0_19, %c0_20, %c4_21] : memref<1x256x8xf32, #tpu.memory_space<vmem>>, vector<1x256x4xf32>
    %37 = vector.shape_cast %36 : vector<1x256x4xf32> to vector<256x4xf32>
    %38 = vector.shape_cast %35 : vector<256x4xf32> to vector<1x256x4xf32>
    tpu.vector_store %arg4[%c0_19, %c0_20, %c4_21], %38 {strides = array<i32>} : memref<1x256x8xf32, #tpu.memory_space<vmem>>, vector<1x256x4xf32>,
    return
  }
  func.func @transform_0(%arg0: i32) -> (i32, i32) {
    %c0_i32 = arith.constant 0 : i32
    %c0_i32_0 = arith.constant 0 : i32
    %c0_i32_1 = arith.constant 0 : i32
    return %c0_i32, %c0_i32_0 : i32, i32
  }
  func.func @transform_1(%arg0: i32) -> (i32, i32, i32) {
    %c0_i32 = arith.constant 0 : i32
    %c0_i32_0 = arith.constant 0 : i32
    %c0_i32_1 = arith.constant 0 : i32
    return %arg0, %c0_i32, %c0_i32_0 : i32, i32, i32
  }
  func.func @transform_2(%arg0: i32) -> (i32, i32, i32) {
    %c0_i32 = arith.constant 0 : i32
    %c0_i32_0 = arith.constant 0 : i32
    %c0_i32_1 = arith.constant 0 : i32
    return %arg0, %c0_i32, %c0_i32_0 : i32, i32, i32
  }
  func.func @transform_3(%arg0: i32) -> (i32, i32, i32) {
    %c0_i32 = arith.constant 0 : i32
    %c0_i32_0 = arith.constant 0 : i32
    %c0_i32_1 = arith.constant 0 : i32
    return %arg0, %c0_i32, %c0_i32_0 : i32, i32, i32
  }
}

</mosaic_0001>

<bundles_post_ra>
// kernel: tpu_custom_call.1
= control target key start
LH: loop header
LB: loop body
LE: loop exit
PB: predicated region body
PF: predicated region fallthrough
CT: control target
= control target key end

     0   :  { %8 = vsyncpa [#allocation3], 0  ;;  %s1503_s0 = inlined_call_operand.vmem [shape: f32[2,256], index: 0, kind: input, shape index: {}]   ;;  %s1504_s1 = inlined_call_operand.vmem [shape: f32[6,2,1], index: 1, kind: input, shape index: {}]   ;;  %s1505_s2 = inlined_call_operand.hbm [shape: f32[6,8,256], index: 2, kind: input, shape index: {}]   ;;  %s1506_s3 = inlined_call_operand.vmem [shape: f32[6,256,8], index: 3, kind: output, shape index: {}]  }
   0x1   :  { %10 = vsyncpa [#allocation3 + $0x1], 0  ;;  %s1079_s12 = smov 0   ;;  %s1081_s13 = smov 0  }
   0x2   :  { %s1083_s14 = smov 0   ;;  %s1085_s15 = smov 0  }
   0x3 LB: > { %s1098_s16 = sadd.s32 4294967295, %s1053_s15   ;;  %s1101_s17 = sadd.s32 1, %s1053_s15   ;;  %s1053_s15 = sphi %s1085_s15, %s1516_s15   ;;  %s1049_s14 = sphi %s1083_s14, %s1515_s14   ;;  %s1045_s13 = sphi %s1081_s13, %s1514_s13   ;;  %s1041_s12 = sphi %s1079_s12, %s1513_s12  }
   0x4   : > { %s67_s18 = ssub.s32 %s1053_s15, %s1101_s17  ;;  %s70_s19 = sadd.s32 1, %s1049_s14 }
   0x5   : > { %p68_p0 = scmp.eq.s32.totalorder %s67_s18, 0  ;;  %p77_p1 = scmp.ne.s32.totalorder %s1049_s14, %s1045_s13 }
   0x6   : > { %p78_p2 = scmp.eq.s32.totalorder %s1053_s15, 0  ;;  %p83_p3 = scmp.ne.s32.totalorder %s1045_s13, %s1041_s12 }
   0x7   : > { %s1111_s20 = scalar_select %p68_p0, %s1049_s14, %s70_s19  }
   0x8   : > { %p79_p4 = por %p78_p2, %p77_p1  ;;  %p84_p5 = scmp.eq.s32.totalorder %s1098_s16, 0 }
   0x9   : > { %p933_p6 = scmp.lt.s32.totalorder %s1053_s15, 6  ;;  %s143_s22 = sand.u32 1, %s1049_s14  }
   0xa   : > { %p1115_p7 = por %p84_p5, %p83_p3  ;;  %s910_s23 = sshll.u32 %s143_s22, 4 }
   0xb   : > { %s925_s24 = sshll.u32 %s1053_s15, 8  ;;  %s147_s28 = scalar_lea.vmem [#allocation2], %s910_s23 }
   0xc   : > { %s1508_s21 = scalar_select %p1115_p7, 1, 0 }
   0xd   : > { %s1124_s27 = scalar_lea.hbm %s1505_s2, %s925_s24  ;;  %s155_s29 = sshll.u32 %s147_s28, 4  ;;  %s1126_s29 = int_to_ptr.vmem [resolvable:$true] %s155_s29 }
   0xe   : > { %p1128_p8 = pnand %p933_p6, %p79_p4  ;;  %s144_s4 = scalar_lea.sflag [#allocation3], %s143_s22 }
   0xf   : > { %s991_s5 = scalar_lea.hbm %s1124_s27, 256  ;;  %s996_s8 = scalar_lea.hbm %s1505_s2, 1536 }
  0x10   : > { %p992_p11 = scmp.ne.s32.totalorder %s1124_s27, %s991_s5  ;;  %p993_p12 = pneg %p1128_p8 }
  0x11   : > { %p997_p1 = scmp.lt.s32.totalorder %s1124_s27, %s1505_s2  ;;  %p998_p2 = scmp.lt.s32.totalorder %s996_s8, %s991_s5 }
  0x12   : > { %p994_p13 = pnand %p993_p12, %p992_p11 }
  0x13   : > { %p999_p3 = por %p998_p2, %p997_p1 }
  0x14   : > { %p995_p0 = pneg %p994_p13 }
  0x16   : > { %p1000_p4 = pnand %p999_p3, %p995_p0 }
  0x18   : > { %1003 = shalt.err (!%p1000_p4)
}
  0x19   : > { %s1004_s11 = scalar_lea.vmem %s1126_s29, 256  ;;  %s1055_s12 = smov [#allocation2]  }
  0x1a   : > { %p1005_p5 = scmp.ne.s32.totalorder %s1126_s29, %s1004_s11  ;;  %s1009_s18 = sshll.u32 %s1055_s12, 4  ;;  %s1010_s18 = int_to_ptr.vmem [resolvable:$false] %s1009_s18 }
  0x1b   : > { %s1011_s19 = scalar_lea.vmem %s1010_s18, 512  ;;  %p1012_p13 = scmp.lt.s32.totalorder %s1126_s29, %s1010_s18 }
  0x1c   : > { %p1007_p6 = pnand %p1005_p5, %p993_p12  ;;  %p1013_p9 = scmp.lt.s32.totalorder %s1011_s19, %s1004_s11 }
  0x1e   : > { %p1008_p11 = pneg %p1007_p6  ;;  %p1014_p10 = por %p1013_p9, %p1012_p13 }
  0x20   : > { %p1015_p7 = pnand %p1014_p10, %p1008_p11 }
  0x22   : > { %1018 = shalt.err (!%p1015_p7)
}
  0x23   : > { %932 = dma.hbm_to_vmem [thread:$0]  (!%p1128_p8), %s1124_s27, 256, %s1126_s29, %s144_s4  }
  0x24   : > { %p1510_p0 = scmp.lt.s32.totalorder %s1053_s15, 7  ;;  %p1511_p1 = scmp.ge.s32.totalorder %s1053_s15, 1 }
  0x26   : > { %p161_p12 = pnand %p1511_p1, %p1510_p0 }
  0x27   : > { %s166_s22 = sand.u32 (!%p161_p12), 1, %s1045_s13   ;;  %p1512_p9 = scmp.ne.s32.totalorder (!%p161_p12), %s1508_s21, 0 }
  0x28   : > { %164 = sbr.rel (%p161_p12) target bundleno = 641 (0x281), region = 32  ;;  %s914_s23 = sshll.u32 (!%p161_p12), %s166_s22, 4 }
  0x29   : > { %s167_s24 = scalar_lea.sflag (!%p161_p12), [#allocation3], %s166_s22  ;;  %s1157_s25 = scalar_lea.vmem (!%p161_p12), [#allocation2], %s914_s23 }
  0x2d   : > { %1036 = dma.done.wait (%p1512_p9), %s167_s24, 256  }
  0x2e   : > { %1038 = vsyncadd (%p1512_p9), %s167_s24, 4294967040  ;;  %p197_p7 = scmp.lt.s32.totalorder %s1098_s16, 5  ;;  %v1056_v0 = vmov 0   ;;  %v583_v2 = vld [vmem:[%s1157_s25] sm:$0xf0]  ;;  %vm323_vm0 = vcmask 15360  }
  0x2f   : > { %970 = vset.pattern.permute.xlu0 %v1056_v0  ;;  %v921_v3 = vmul.f32 -1.442695, %v583_v2  ;;  %v207_v8 = vld [vmem:[%s1157_s25] sm:$0x3]  ;;  %v208_v9 = vld [vmem:[%s1157_s25 + $0x8] sm:$0x3] }
  0x30   : > { %s1518_s16 = smov (!%p197_p7, %s1098_s16), 5  ;;  %v918_v10 = vmul.f32 -1.442695, %v207_v8  ;;  %v919_v11 = vmul.f32 -1.442695, %v208_v9  ;;  %s1058_s7 = smov 4  }
  0x31   : > { %s915_s15 = sshll.u32 %s1518_s16, 1  ;;  %971 = vpow2.f32 %v921_v3  ;;  %v236_v15 = vld [vmem:[%s1157_s25] sm:$0xc]  ;;  %v237_v17 = vld [vmem:[%s1157_s25 + $0x8] sm:$0xc]  ;;  %s926_s30 = sshll.u32 %s1518_s16, 8 }
  0x32   : > { %s200_s28 = scalar_lea.vmem %s1504_s1, %s915_s15  ;;  %v238_v18 = vmul.f32 1.442695, %v236_v15  ;;  %v240_v19 = vmul.f32 1.442695, %v237_v17  ;;  %v584_v48 = vld [vmem:[%s1157_s25 + $0x8] sm:$0xf0]  ;;  %s1216_s6 = scalar_lea.vmem %s1506_s3, %s926_s30 }
  0x33   : > { %v242_v1 = vld [vmem:[%s200_s28] sm:$0x3]  ;;  %v922_v50 = vmul.f32 -1.442695, %v584_v48  ;;  %s1057_s16 = smov 2   ;;  %vm550_vm1 = vcmask 31760  }
  0x34   : > { %245 = vperm.xlu0 %970, %v242_v1   ;;  %v920_v20 = vld.sshfl [vmem:[%s1503_s0] sm:$0x33 pattern:$0x76325410]  ;;  %vm795_vm2 = vcmask 64544  }
  0x35   : > { %v229_v22 = vcombine.high %v920_v20, %v920_v20 }
  0x3e   : > { %v972_v4 = vpop.eup %971 }
  0x3f   : > { %v591_v5 = vadd.f32 1.0, %v972_v4 }
  0x41   : > { %973 = vrcp.f32 %v591_v5 }
  0x42   : > { %975 = vpow2.f32 %v918_v10 }
  0x43   : > { %977 = vpow2.f32 %v919_v11 }
  0x4e   : > { %v974_v6 = vpop.eup %973 }
  0x4f   : > { %v599_v7 = vrot.slane %v974_v6, 4  ;;  %v976_v12 = vpop.eup %975 }
  0x50   : > { %v978_v13 = vpop.eup %977  ;;  %v215_v14 = vadd.f32 1.0, %v976_v12 }
  0x51   : > { %603 = vxpose.xlu1.b32.start.end [1/1] (short) %v599_v7, 128  ;;  %v216_v16 = vadd.f32 1.0, %v978_v13 }
  0x52   : > { %979 = vrcp.f32 %v215_v14 }
  0x53   : > { %981 = vrcp.f32 %v216_v16 }
  0x54   : > { %983 = vpow2.f32 %v238_v18 }
  0x55   : > { %985 = vpow2.f32 %v240_v19 }
  0x56   : > { %987 = vpow2.f32 %v922_v50 }
  0x5f   : > { %v980_v21 = vpop.eup %979 }
  0x60   : > { %v982_v23 = vpop.eup %981  ;;  %v232_v25 = vadd.f32 %v980_v21, %v920_v20 }
  0x61   : > { %v984_v24 = vpop.eup %983  ;;  %v233_v26 = vadd.f32 %v982_v23, %v229_v22 }
  0x62   : > { %v986_v27 = vpop.eup %985  ;;  %v234_v32 = vmul.f32 8.0, %v232_v25 }
  0x63   : > { %v235_v33 = vmul.f32 8.0, %v233_v26  ;;  %v988_v54 = vpop.eup %987 }
  0x64   : > { %v592_v55 = vadd.f32 1.0, %v988_v54 }
  0x66   : > { %989 = vrcp.f32 %v592_v55 }
  0x73   : > { %v990_v59 = vpop.eup %989 }
  0x74   : > { %v600_v61 = vrot.slane %v990_v59, 4 }
  0xaf   : > { %v246_v28 = vpop.permute.xlu0 %245 }
  0xb0   : > { %v247_v29 = vrot.slane %v246_v28, 6 }
  0xb2   : > { %v249_v30 = vmul.f32 %v984_v24, %v247_v29  ;;  %v250_v31 = vmul.f32 %v986_v27, %v247_v29 }
  0xb4   : > { %v253_v34 = vrot.slane %v249_v30, 2  ;;  %v254_v35 = vrot.slane %v250_v31, 2 }
  0xb6   : > { %v257_v36 = vsub.f32 %v234_v32, %v253_v34  ;;  %v258_v37 = vsub.f32 %v235_v33, %v254_v35  ;;  %v357_v44 = vadd.f32 %v254_v35, %v235_v33  ;;  %v356_v45 = vadd.f32 %v253_v34, %v234_v32 }
  0xb8   : > { %259 = vxpose.xlu0.b32.start.end [1/1] (short) %v257_v36, 128  ;;  %291 = vxpose.xlu1.b32.start.end [1/1] (short) %v258_v37, 128 }
  0xcd   : > { %v1179_v38 = vpop.trf.xlu1 }
  0xd1   : > { %v1181_v39 = vpop.trf.xlu1 }
  0xd5   : > { %v1183_v40 = vpop.trf.xlu1 }
  0xd9   : > { %v1185_v41 = vpop.trf.xlu1 }
  0xdd   : > { %v1187_v42 = vpop.trf.xlu1 }
  0xe1   : > { %v1189_v43 = vpop.trf.xlu1 }
  0xe5   : > { %v1191_v46 = vpop.trf.xlu1 }
  0xe9   : > { %v1193_v47 = vpop.trf.xlu1 }
  0xed   : > { %v1196_v49 = vpop.trf.xlu1 }
  0xf1   : > { %v1198_v51 = vpop.trf.xlu1 }
  0xf5   : > { %390 = vxpose.xlu0.b32.start.end [1/1] (short) %v357_v44, 128  ;;  %358 = vxpose.xlu1.b32.start.end [1/1] (short) %v356_v45, 128  ;;  %v1200_v52 = vpop.trf.xlu1 }
  0xf9   : > { %v1202_v53 = vpop.trf.xlu1 }
  0xfd   : > { %v1204_v56 = vpop.trf.xlu1 }
 0x101   : > { %v1206_v57 = vpop.trf.xlu1 }
 0x105   : > { %v1208_v58 = vpop.trf.xlu1 }
 0x109   : > { %v1210_v60 = vpop.trf.xlu1 }
 0x132   : > { %635 = vxpose.xlu0.b32.start.end [1/1] (short) %v600_v61, 128 }
 0x134   : > { %v307_v62 = vpop.trf.xlu1  ;;  %v275_v63 = vpop.trf.xlu0 }
 0x135   : > { %340 = vst.msk [vmem:[%s1216_s6 + $0x80] sm:$0xff] %vm323_vm0, %v307_v62  ;;  %324 = vst.msk [vmem:[%s1216_s6] sm:$0xff] %vm323_vm0, %v275_v63 }
 0x138   : > { %v308_v0 = vpop.trf.xlu1  ;;  %v276_v1 = vpop.trf.xlu0 }
 0x139   : > { %341 = vst.msk [vmem:[%s1216_s6 + $0x88] sm:$0xff] %vm323_vm0, %v308_v0  ;;  %325 = vst.msk [vmem:[%s1216_s6 + $0x8] sm:$0xff] %vm323_vm0, %v276_v1 }
 0x13c   : > { %v309_v2 = vpop.trf.xlu1  ;;  %v277_v3 = vpop.trf.xlu0 }
 0x13d   : > { %342 = vst.msk [vmem:[%s1216_s6 + $0x90] sm:$0xff] %vm323_vm0, %v309_v2  ;;  %326 = vst.msk [vmem:[%s1216_s6 + $0x10] sm:$0xff] %vm323_vm0, %v277_v3 }
 0x140   : > { %v310_v4 = vpop.trf.xlu1  ;;  %v278_v5 = vpop.trf.xlu0 }
 0x141   : > { %343 = vst.msk [vmem:[%s1216_s6 + $0x98] sm:$0xff] %vm323_vm0, %v310_v4  ;;  %327 = vst.msk [vmem:[%s1216_s6 + $0x18] sm:$0xff] %vm323_vm0, %v278_v5 }
 0x144   : > { %v311_v6 = vpop.trf.xlu1  ;;  %v279_v7 = vpop.trf.xlu0 }
 0x145   : > { %344 = vst.msk [vmem:[%s1216_s6 + $0xa0] sm:$0xff] %vm323_vm0, %v311_v6  ;;  %328 = vst.msk [vmem:[%s1216_s6 + $0x20] sm:$0xff] %vm323_vm0, %v279_v7 }
 0x148   : > { %v312_v8 = vpop.trf.xlu1  ;;  %v280_v9 = vpop.trf.xlu0 }
 0x149   : > { %345 = vst.msk [vmem:[%s1216_s6 + $0xa8] sm:$0xff] %vm323_vm0, %v312_v8  ;;  %329 = vst.msk [vmem:[%s1216_s6 + $0x28] sm:$0xff] %vm323_vm0, %v280_v9 }
 0x14c   : > { %v313_v10 = vpop.trf.xlu1  ;;  %v281_v11 = vpop.trf.xlu0 }
 0x14d   : > { %346 = vst.msk [vmem:[%s1216_s6 + $0xb0] sm:$0xff] %vm323_vm0, %v313_v10  ;;  %330 = vst.msk [vmem:[%s1216_s6 + $0x30] sm:$0xff] %vm323_vm0, %v281_v11 }
 0x150   : > { %v314_v12 = vpop.trf.xlu1  ;;  %v282_v13 = vpop.trf.xlu0 }
 0x151   : > { %347 = vst.msk [vmem:[%s1216_s6 + $0xb8] sm:$0xff] %vm323_vm0, %v314_v12  ;;  %331 = vst.msk [vmem:[%s1216_s6 + $0x38] sm:$0xff] %vm323_vm0, %v282_v13 }
 0x154   : > { %v315_v14 = vpop.trf.xlu1  ;;  %v283_v15 = vpop.trf.xlu0 }
 0x155   : > { %348 = vst.msk [vmem:[%s1216_s6 + $0xc0] sm:$0xff] %vm323_vm0, %v315_v14  ;;  %332 = vst.msk [vmem:[%s1216_s6 + $0x40] sm:$0xff] %vm323_vm0, %v283_v15 }
 0x158   : > { %v316_v16 = vpop.trf.xlu1  ;;  %v284_v17 = vpop.trf.xlu0 }
 0x159   : > { %349 = vst.msk [vmem:[%s1216_s6 + $0xc8] sm:$0xff] %vm323_vm0, %v316_v16  ;;  %333 = vst.msk [vmem:[%s1216_s6 + $0x48] sm:$0xff] %vm323_vm0, %v284_v17 }
 0x15c   : > { %v317_v18 = vpop.trf.xlu1  ;;  %v285_v19 = vpop.trf.xlu0 }
 0x15d   : > { %350 = vst.msk [vmem:[%s1216_s6 + $0xd0] sm:$0xff] %vm323_vm0, %v317_v18  ;;  %334 = vst.msk [vmem:[%s1216_s6 + $0x50] sm:$0xff] %vm323_vm0, %v285_v19 }
 0x160   : > { %v318_v20 = vpop.trf.xlu1  ;;  %v286_v21 = vpop.trf.xlu0 }
 0x161   : > { %351 = vst.msk [vmem:[%s1216_s6 + $0xd8] sm:$0xff] %vm323_vm0, %v318_v20  ;;  %335 = vst.msk [vmem:[%s1216_s6 + $0x58] sm:$0xff] %vm323_vm0, %v286_v21 }
 0x164   : > { %v319_v22 = vpop.trf.xlu1  ;;  %v287_v23 = vpop.trf.xlu0 }
 0x165   : > { %352 = vst.msk [vmem:[%s1216_s6 + $0xe0] sm:$0xff] %vm323_vm0, %v319_v22  ;;  %336 = vst.msk [vmem:[%s1216_s6 + $0x60] sm:$0xff] %vm323_vm0, %v287_v23 }
 0x168   : > { %v320_v24 = vpop.trf.xlu1  ;;  %v288_v25 = vpop.trf.xlu0 }
 0x169   : > { %353 = vst.msk [vmem:[%s1216_s6 + $0xe8] sm:$0xff] %vm323_vm0, %v320_v24  ;;  %337 = vst.msk [vmem:[%s1216_s6 + $0x68] sm:$0xff] %vm323_vm0, %v288_v25 }
 0x16c   : > { %v321_v26 = vpop.trf.xlu1  ;;  %v289_v27 = vpop.trf.xlu0 }
 0x16d   : > { %354 = vst.msk [vmem:[%s1216_s6 + $0xf0] sm:$0xff] %vm323_vm0, %v321_v26  ;;  %338 = vst.msk [vmem:[%s1216_s6 + $0x70] sm:$0xff] %vm323_vm0, %v289_v27 }
 0x170   : > { %v322_v28 = vpop.trf.xlu1  ;;  %v290_v29 = vpop.trf.xlu0 }
 0x171   : > { %355 = vst.msk [vmem:[%s1216_s6 + $0xf8] sm:$0xff] %vm323_vm0, %v322_v28  ;;  %339 = vst.msk [vmem:[%s1216_s6 + $0x78] sm:$0xff] %vm323_vm0, %v290_v29 }
 0x174   : > { %v374_v30 = vpop.trf.xlu1  ;;  %v406_v31 = vpop.trf.xlu0 }
 0x175   : > { %454 = vrot.lane.b32.xlu1 %v374_v30, %s1057_s16 }
 0x178   : > { %v375_v32 = vpop.trf.xlu1  ;;  %v407_v33 = vpop.trf.xlu0 }
 0x179   : > { %486 = vrot.lane.b32.xlu1 %v406_v31, %s1057_s16 }
 0x17c   : > { %v376_v34 = vpop.trf.xlu1  ;;  %v408_v35 = vpop.trf.xlu0 }
 0x17d   : > { %458 = vrot.lane.b32.xlu1 %v376_v34, %s1057_s16 }
 0x180   : > { %v377_v36 = vpop.trf.xlu1  ;;  %v409_v37 = vpop.trf.xlu0 }
 0x181   : > { %490 = vrot.lane.b32.xlu1 %v408_v35, %s1057_s16 }
 0x184   : > { %v378_v44 = vpop.trf.xlu1  ;;  %v410_v45 = vpop.trf.xlu0 }
 0x185   : > { %460 = vrot.lane.b32.xlu1 %v377_v36, %s1057_s16 }
 0x188   : > { %v379_v48 = vpop.trf.xlu1  ;;  %v411_v50 = vpop.trf.xlu0 }
 0x189   : > { %462 = vrot.lane.b32.xlu1 %v378_v44, %s1057_s16 }
 0x18c   : > { %v380_v54 = vpop.trf.xlu1  ;;  %v412_v55 = vpop.trf.xlu0 }
 0x18d   : > { %494 = vrot.lane.b32.xlu1 %v410_v45, %s1057_s16 }
 0x190   : > { %v381_v59 = vpop.trf.xlu1  ;;  %v413_v61 = vpop.trf.xlu0 }
 0x191   : > { %464 = vrot.lane.b32.xlu1 %v379_v48, %s1057_s16 }
 0x194   : > { %v382_v62 = vpop.trf.xlu1  ;;  %v414_v63 = vpop.trf.xlu0 }
 0x195   : > { %466 = vrot.lane.b32.xlu1 %v380_v54, %s1057_s16 }
 0x197   : > { %456 = vrot.lane.b32.xlu0 %v375_v32, %s1057_s16 }
 0x198   : > { %v383_v0 = vpop.trf.xlu1  ;;  %v415_v1 = vpop.trf.xlu0 }
 0x199   : > { %498 = vrot.lane.b32.xlu1 %v412_v55, %s1057_s16 }
 0x19c   : > { %v384_v2 = vpop.trf.xlu1  ;;  %v416_v3 = vpop.trf.xlu0 }
 0x19d   : > { %468 = vrot.lane.b32.xlu1 %v381_v59, %s1057_s16 }
 0x1a0   : > { %v385_v4 = vpop.trf.xlu1  ;;  %v417_v5 = vpop.trf.xlu0 }
 0x1a1   : > { %470 = vrot.lane.b32.xlu1 %v382_v62, %s1057_s16 }
 0x1a4   : > { %v386_v6 = vpop.trf.xlu1  ;;  %v418_v7 = vpop.trf.xlu0 }
 0x1a5   : > { %472 = vrot.lane.b32.xlu1 %v383_v0, %s1057_s16 }
 0x1a8   : > { %v387_v8 = vpop.trf.xlu1  ;;  %v419_v9 = vpop.trf.xlu0 }
 0x1a9   : > { %474 = vrot.lane.b32.xlu1 %v384_v2, %s1057_s16  ;;  %480 = vrot.lane.b32.xlu0 %v387_v8, %s1057_s16 }
 0x1ac   : > { %v420_v10 = vpop.trf.xlu0  ;;  %v388_v13 = vpop.trf.xlu1 }
 0x1ad   : > { %476 = vrot.lane.b32.xlu1 %v385_v4, %s1057_s16  ;;  %488 = vrot.lane.b32.xlu0 %v407_v33, %s1057_s16 }
 0x1b0   : > { %v421_v11 = vpop.trf.xlu0  ;;  %v389_v18 = vpop.trf.xlu1 }
 0x1b1   : > { %478 = vrot.lane.b32.xlu1 %v386_v6, %s1057_s16  ;;  %492 = vrot.lane.b32.xlu0 %v409_v37, %s1057_s16 }
 0x1b4   : > { %v651_v12 = vpop.trf.xlu0 }
 0x1b5   : > { %502 = vrot.lane.b32.xlu1 %v414_v63, %s1057_s16  ;;  %496 = vrot.lane.b32.xlu0 %v411_v50, %s1057_s16 }
 0x1b8   : > { %v652_v14 = vpop.trf.xlu0 }
 0x1b9   : > { %500 = vrot.lane.b32.xlu0 %v413_v61, %s1057_s16  ;;  %482 = vrot.lane.b32.xlu1 %v388_v13, %s1057_s16 }
 0x1bc   : > { %v653_v15 = vpop.trf.xlu0 }
 0x1bd   : > { %504 = vrot.lane.b32.xlu0 %v415_v1, %s1057_s16  ;;  %506 = vrot.lane.b32.xlu1 %v416_v3, %s1057_s16 }
 0x1c0   : > { %v654_v16 = vpop.trf.xlu0 }
 0x1c1   : > { %508 = vrot.lane.b32.xlu0 %v417_v5, %s1057_s16  ;;  %510 = vrot.lane.b32.xlu1 %v418_v7, %s1057_s16 }
 0x1c4   : > { %v655_v17 = vpop.trf.xlu0 }
 0x1c5   : > { %512 = vrot.lane.b32.xlu0 %v419_v9, %s1057_s16  ;;  %514 = vrot.lane.b32.xlu1 %v420_v10, %s1057_s16 }
 0x1c8   : > { %v656_v19 = vpop.trf.xlu0 }
 0x1c9   : > { %701 = vrot.lane.b32.xlu1 %v1181_v39, %s1058_s7  ;;  %484 = vrot.lane.b32.xlu0 %v389_v18, %s1057_s16 }
 0x1cc   : > { %v657_v20 = vpop.trf.xlu0 }
 0x1cd   : > { %703 = vrot.lane.b32.xlu1 %v1183_v40, %s1058_s7  ;;  %516 = vrot.lane.b32.xlu0 %v421_v11, %s1057_s16 }
 0x1d0   : > { %v658_v21 = vpop.trf.xlu0 }
 0x1d1   : > { %707 = vrot.lane.b32.xlu1 %v1187_v42, %s1058_s7  ;;  %699 = vrot.lane.b32.xlu0 %v1179_v38, %s1058_s7 }
 0x1d4   : > { %v659_v39 = vpop.trf.xlu0 }
 0x1d5   : > { %711 = vrot.lane.b32.xlu1 %v1191_v46, %s1058_s7  ;;  %705 = vrot.lane.b32.xlu0 %v1185_v41, %s1058_s7 }
 0x1d8   : > { %v660_v38 = vpop.trf.xlu0 }
 0x1d9   : > { %715 = vrot.lane.b32.xlu1 %v1196_v49, %s1058_s7  ;;  %709 = vrot.lane.b32.xlu0 %v1189_v43, %s1058_s7 }
 0x1dc   : > { %v661_v40 = vpop.trf.xlu0 }
 0x1dd   : > { %719 = vrot.lane.b32.xlu1 %v1200_v52, %s1058_s7  ;;  %713 = vrot.lane.b32.xlu0 %v1193_v47, %s1058_s7 }
 0x1e0   : > { %v662_v43 = vpop.trf.xlu0 }
 0x1e1   : > { %723 = vrot.lane.b32.xlu1 %v1204_v56, %s1058_s7  ;;  %717 = vrot.lane.b32.xlu0 %v1198_v51, %s1058_s7 }
 0x1e4   : > { %v663_v47 = vpop.trf.xlu0 }
 0x1e5   : > { %727 = vrot.lane.b32.xlu1 %v1208_v58, %s1058_s7  ;;  %721 = vrot.lane.b32.xlu0 %v1202_v53, %s1058_s7 }
 0x1e7   : > { %v455_v41 = vpop.permute.xlu1 %454 }
 0x1e8   : > { %551 = vst.msk [vmem:[%s1216_s6] sm:$0xff] %vm550_vm1, %v455_v41  ;;  %v664_v52 = vpop.trf.xlu0 }
 0x1e9   : > { %731 = vrot.lane.b32.xlu1 %v651_v12, %s1058_s7  ;;  %725 = vrot.lane.b32.xlu0 %v1206_v57, %s1058_s7 }
 0x1eb   : > { %v487_v42 = vpop.permute.xlu1 %486 }
 0x1ec   : > { %567 = vst.msk [vmem:[%s1216_s6 + $0x80] sm:$0xff] %vm550_vm1, %v487_v42  ;;  %v665_v56 = vpop.trf.xlu0 }
 0x1ed   : > { %735 = vrot.lane.b32.xlu1 %v653_v15, %s1058_s7  ;;  %729 = vrot.lane.b32.xlu0 %v1210_v60, %s1058_s7 }
 0x1ef   : > { %v459_v46 = vpop.permute.xlu1 %458 }
 0x1f0   : > { %553 = vst.msk [vmem:[%s1216_s6 + $0x10] sm:$0xff] %vm550_vm1, %v459_v46  ;;  %v666_v60 = vpop.trf.xlu0 }
 0x1f1   : > { %739 = vrot.lane.b32.xlu1 %v655_v17, %s1058_s7  ;;  %733 = vrot.lane.b32.xlu0 %v652_v14, %s1058_s7 }
 0x1f3   : > { %v491_v49 = vpop.permute.xlu1 %490 }
 0x1f4   : > { %569 = vst.msk [vmem:[%s1216_s6 + $0x90] sm:$0xff] %vm550_vm1, %v491_v49 }
 0x1f5   : > { %743 = vrot.lane.b32.xlu1 %v657_v20, %s1058_s7  ;;  %737 = vrot.lane.b32.xlu0 %v654_v16, %s1058_s7 }
 0x1f7   : > { %v461_v51 = vpop.permute.xlu1 %460 }
 0x1f8   : > { %554 = vst.msk [vmem:[%s1216_s6 + $0x18] sm:$0xff] %vm550_vm1, %v461_v51 }
 0x1f9   : > { %747 = vrot.lane.b32.xlu1 %v659_v39, %s1058_s7  ;;  %741 = vrot.lane.b32.xlu0 %v656_v19, %s1058_s7 }
 0x1fb   : > { %v463_v53 = vpop.permute.xlu1 %462 }
 0x1fc   : > { %555 = vst.msk [vmem:[%s1216_s6 + $0x20] sm:$0xff] %vm550_vm1, %v463_v53 }
 0x1fd   : > { %751 = vrot.lane.b32.xlu1 %v661_v40, %s1058_s7  ;;  %745 = vrot.lane.b32.xlu0 %v658_v21, %s1058_s7 }
 0x1ff   : > { %v495_v57 = vpop.permute.xlu1 %494 }
 0x200   : > { %571 = vst.msk [vmem:[%s1216_s6 + $0xa0] sm:$0xff] %vm550_vm1, %v495_v57 }
 0x201   : > { %755 = vrot.lane.b32.xlu1 %v663_v47, %s1058_s7  ;;  %749 = vrot.lane.b32.xlu0 %v660_v38, %s1058_s7 }
 0x203   : > { %v465_v58 = vpop.permute.xlu1 %464 }
 0x204   : > { %556 = vst.msk [vmem:[%s1216_s6 + $0x28] sm:$0xff] %vm550_vm1, %v465_v58 }
 0x205   : > { %753 = vrot.lane.b32.xlu0 %v662_v43, %s1058_s7  ;;  %759 = vrot.lane.b32.xlu1 %v665_v56, %s1058_s7 }
 0x207   : > { %v467_v22 = vpop.permute.xlu1 %466 }
 0x208   : > { %557 = vst.msk [vmem:[%s1216_s6 + $0x30] sm:$0xff] %vm550_vm1, %v467_v22 }
 0x209   : > { %v457_v23 = vpop.permute.xlu0 %456  ;;  %757 = vrot.lane.b32.xlu0 %v664_v52, %s1058_s7 }
 0x20a   : > { %552 = vst.msk [vmem:[%s1216_s6 + $0x8] sm:$0xff] %vm550_vm1, %v457_v23 }
 0x20b   : > { %v499_v24 = vpop.permute.xlu1 %498 }
 0x20c   : > { %573 = vst.msk [vmem:[%s1216_s6 + $0xb0] sm:$0xff] %vm550_vm1, %v499_v24 }
 0x20d   : > { %761 = vrot.lane.b32.xlu0 %v666_v60, %s1058_s7 }
 0x20f   : > { %v469_v25 = vpop.permute.xlu1 %468 }
 0x210   : > { %558 = vst.msk [vmem:[%s1216_s6 + $0x38] sm:$0xff] %vm550_vm1, %v469_v25 }
 0x213   : > { %v471_v26 = vpop.permute.xlu1 %470 }
 0x214   : > { %559 = vst.msk [vmem:[%s1216_s6 + $0x40] sm:$0xff] %vm550_vm1, %v471_v26 }
 0x217   : > { %v473_v27 = vpop.permute.xlu1 %472 }
 0x218   : > { %560 = vst.msk [vmem:[%s1216_s6 + $0x48] sm:$0xff] %vm550_vm1, %v473_v27 }
 0x21b   : > { %v481_v28 = vpop.permute.xlu0 %480  ;;  %v475_v29 = vpop.permute.xlu1 %474 }
 0x21c   : > { %564 = vst.msk [vmem:[%s1216_s6 + $0x68] sm:$0xff] %vm550_vm1, %v481_v28  ;;  %561 = vst.msk [vmem:[%s1216_s6 + $0x50] sm:$0xff] %vm550_vm1, %v475_v29 }
 0x21f   : > { %v489_v30 = vpop.permute.xlu0 %488  ;;  %v477_v31 = vpop.permute.xlu1 %476 }
 0x220   : > { %568 = vst.msk [vmem:[%s1216_s6 + $0x88] sm:$0xff] %vm550_vm1, %v489_v30  ;;  %562 = vst.msk [vmem:[%s1216_s6 + $0x58] sm:$0xff] %vm550_vm1, %v477_v31 }
 0x223   : > { %v493_v32 = vpop.permute.xlu0 %492  ;;  %v479_v33 = vpop.permute.xlu1 %478 }
 0x224   : > { %570 = vst.msk [vmem:[%s1216_s6 + $0x98] sm:$0xff] %vm550_vm1, %v493_v32  ;;  %563 = vst.msk [vmem:[%s1216_s6 + $0x60] sm:$0xff] %vm550_vm1, %v479_v33 }
 0x227   : > { %v497_v34 = vpop.permute.xlu0 %496  ;;  %v503_v35 = vpop.permute.xlu1 %502 }
 0x228   : > { %572 = vst.msk [vmem:[%s1216_s6 + $0xa8] sm:$0xff] %vm550_vm1, %v497_v34  ;;  %575 = vst.msk [vmem:[%s1216_s6 + $0xc0] sm:$0xff] %vm550_vm1, %v503_v35 }
 0x22b   : > { %v501_v36 = vpop.permute.xlu0 %500  ;;  %v483_v37 = vpop.permute.xlu1 %482 }
 0x22c   : > { %574 = vst.msk [vmem:[%s1216_s6 + $0xb8] sm:$0xff] %vm550_vm1, %v501_v36  ;;  %565 = vst.msk [vmem:[%s1216_s6 + $0x70] sm:$0xff] %vm550_vm1, %v483_v37 }
 0x22f   : > { %v505_v44 = vpop.permute.xlu0 %504  ;;  %v507_v45 = vpop.permute.xlu1 %506 }
 0x230   : > { %576 = vst.msk [vmem:[%s1216_s6 + $0xc8] sm:$0xff] %vm550_vm1, %v505_v44  ;;  %577 = vst.msk [vmem:[%s1216_s6 + $0xd0] sm:$0xff] %vm550_vm1, %v507_v45 }
 0x233   : > { %v509_v48 = vpop.permute.xlu0 %508  ;;  %v511_v50 = vpop.permute.xlu1 %510 }
 0x234   : > { %578 = vst.msk [vmem:[%s1216_s6 + $0xd8] sm:$0xff] %vm550_vm1, %v509_v48  ;;  %579 = vst.msk [vmem:[%s1216_s6 + $0xe0] sm:$0xff] %vm550_vm1, %v511_v50 }
 0x237   : > { %v513_v54 = vpop.permute.xlu0 %512  ;;  %v515_v55 = vpop.permute.xlu1 %514 }
 0x238   : > { %580 = vst.msk [vmem:[%s1216_s6 + $0xe8] sm:$0xff] %vm550_vm1, %v513_v54  ;;  %581 = vst.msk [vmem:[%s1216_s6 + $0xf0] sm:$0xff] %vm550_vm1, %v515_v55 }
 0x23b   : > { %v485_v59 = vpop.permute.xlu0 %484  ;;  %v702_v61 = vpop.permute.xlu1 %701 }
 0x23c   : > { %566 = vst.msk [vmem:[%s1216_s6 + $0x78] sm:$0xff] %vm550_vm1, %v485_v59 }
 0x23d   : > { %797 = vst.msk [vmem:[%s1216_s6 + $0x8] sm:$0xff] %vm795_vm2, %v702_v61 }
 0x23f   : > { %v517_v62 = vpop.permute.xlu0 %516  ;;  %v704_v63 = vpop.permute.xlu1 %703 }
 0x240   : > { %582 = vst.msk [vmem:[%s1216_s6 + $0xf8] sm:$0xff] %vm550_vm1, %v517_v62 }
 0x241   : > { %798 = vst.msk [vmem:[%s1216_s6 + $0x10] sm:$0xff] %vm795_vm2, %v704_v63 }
 0x243   : > { %v700_v0 = vpop.permute.xlu0 %699  ;;  %v708_v1 = vpop.permute.xlu1 %707 }
 0x244   : > { %796 = vst.msk [vmem:[%s1216_s6] sm:$0xff] %vm795_vm2, %v700_v0  ;;  %800 = vst.msk [vmem:[%s1216_s6 + $0x20] sm:$0xff] %vm795_vm2, %v708_v1 }
 0x247   : > { %v706_v2 = vpop.permute.xlu0 %705  ;;  %v712_v3 = vpop.permute.xlu1 %711 }
 0x248   : > { %799 = vst.msk [vmem:[%s1216_s6 + $0x18] sm:$0xff] %vm795_vm2, %v706_v2  ;;  %802 = vst.msk [vmem:[%s1216_s6 + $0x30] sm:$0xff] %vm795_vm2, %v712_v3 }
 0x24b   : > { %v710_v4 = vpop.permute.xlu0 %709  ;;  %v716_v5 = vpop.permute.xlu1 %715 }
 0x24c   : > { %801 = vst.msk [vmem:[%s1216_s6 + $0x28] sm:$0xff] %vm795_vm2, %v710_v4  ;;  %804 = vst.msk [vmem:[%s1216_s6 + $0x40] sm:$0xff] %vm795_vm2, %v716_v5 }
 0x24f   : > { %v714_v6 = vpop.permute.xlu0 %713  ;;  %v720_v7 = vpop.permute.xlu1 %719 }
 0x250   : > { %803 = vst.msk [vmem:[%s1216_s6 + $0x38] sm:$0xff] %vm795_vm2, %v714_v6  ;;  %806 = vst.msk [vmem:[%s1216_s6 + $0x50] sm:$0xff] %vm795_vm2, %v720_v7 }
 0x253   : > { %v718_v8 = vpop.permute.xlu0 %717  ;;  %v724_v9 = vpop.permute.xlu1 %723 }
 0x254   : > { %805 = vst.msk [vmem:[%s1216_s6 + $0x48] sm:$0xff] %vm795_vm2, %v718_v8  ;;  %808 = vst.msk [vmem:[%s1216_s6 + $0x60] sm:$0xff] %vm795_vm2, %v724_v9 }
 0x257   : > { %v722_v10 = vpop.permute.xlu0 %721  ;;  %v728_v11 = vpop.permute.xlu1 %727 }
 0x258   : > { %807 = vst.msk [vmem:[%s1216_s6 + $0x58] sm:$0xff] %vm795_vm2, %v722_v10  ;;  %810 = vst.msk [vmem:[%s1216_s6 + $0x70] sm:$0xff] %vm795_vm2, %v728_v11 }
 0x25b   : > { %v726_v12 = vpop.permute.xlu0 %725  ;;  %v732_v13 = vpop.permute.xlu1 %731 }
 0x25c   : > { %809 = vst.msk [vmem:[%s1216_s6 + $0x68] sm:$0xff] %vm795_vm2, %v726_v12  ;;  %812 = vst.msk [vmem:[%s1216_s6 + $0x80] sm:$0xff] %vm795_vm2, %v732_v13 }
 0x25f   : > { %v730_v14 = vpop.permute.xlu0 %729  ;;  %v736_v15 = vpop.permute.xlu1 %735 }
 0x260   : > { %811 = vst.msk [vmem:[%s1216_s6 + $0x78] sm:$0xff] %vm795_vm2, %v730_v14  ;;  %814 = vst.msk [vmem:[%s1216_s6 + $0x90] sm:$0xff] %vm795_vm2, %v736_v15 }
 0x263   : > { %v734_v16 = vpop.permute.xlu0 %733  ;;  %v740_v17 = vpop.permute.xlu1 %739 }
 0x264   : > { %813 = vst.msk [vmem:[%s1216_s6 + $0x88] sm:$0xff] %vm795_vm2, %v734_v16  ;;  %816 = vst.msk [vmem:[%s1216_s6 + $0xa0] sm:$0xff] %vm795_vm2, %v740_v17 }
 0x267   : > { %v738_v18 = vpop.permute.xlu0 %737  ;;  %v744_v19 = vpop.permute.xlu1 %743 }
 0x268   : > { %815 = vst.msk [vmem:[%s1216_s6 + $0x98] sm:$0xff] %vm795_vm2, %v738_v18  ;;  %818 = vst.msk [vmem:[%s1216_s6 + $0xb0] sm:$0xff] %vm795_vm2, %v744_v19 }
 0x26b   : > { %v742_v20 = vpop.permute.xlu0 %741  ;;  %v748_v21 = vpop.permute.xlu1 %747 }
 0x26c   : > { %817 = vst.msk [vmem:[%s1216_s6 + $0xa8] sm:$0xff] %vm795_vm2, %v742_v20  ;;  %820 = vst.msk [vmem:[%s1216_s6 + $0xc0] sm:$0xff] %vm795_vm2, %v748_v21 }
 0x26f   : > { %v746_v39 = vpop.permute.xlu0 %745  ;;  %v752_v38 = vpop.permute.xlu1 %751 }
 0x270   : > { %819 = vst.msk [vmem:[%s1216_s6 + $0xb8] sm:$0xff] %vm795_vm2, %v746_v39  ;;  %822 = vst.msk [vmem:[%s1216_s6 + $0xd0] sm:$0xff] %vm795_vm2, %v752_v38 }
 0x273   : > { %v750_v40 = vpop.permute.xlu0 %749  ;;  %v756_v41 = vpop.permute.xlu1 %755 }
 0x274   : > { %821 = vst.msk [vmem:[%s1216_s6 + $0xc8] sm:$0xff] %vm795_vm2, %v750_v40  ;;  %824 = vst.msk [vmem:[%s1216_s6 + $0xe0] sm:$0xff] %vm795_vm2, %v756_v41 }
 0x277   : > { %v754_v42 = vpop.permute.xlu0 %753  ;;  %v760_v43 = vpop.permute.xlu1 %759 }
 0x278   : > { %823 = vst.msk [vmem:[%s1216_s6 + $0xd8] sm:$0xff] %vm795_vm2, %v754_v42  ;;  %826 = vst.msk [vmem:[%s1216_s6 + $0xf0] sm:$0xff] %vm795_vm2, %v760_v43 }
 0x27b   : > { %v758_v46 = vpop.permute.xlu0 %757 }
 0x27c   : > { %825 = vst.msk [vmem:[%s1216_s6 + $0xe8] sm:$0xff] %vm795_vm2, %v758_v46 }
 0x27f   : > { %v762_v47 = vpop.permute.xlu0 %761 }
 0x280   : > { %827 = vst.msk [vmem:[%s1216_s6 + $0xf8] sm:$0xff] %vm795_vm2, %v762_v47 }
 0x281 PF: > { %p13_p8 = scmp.ge.s32.totalorder %s1101_s17, 8   ;;  %s1513_s12 = smov %s1045_s13 }
 0x282   : > { %s1514_s13 = smov %s1049_s14  ;;  %s1515_s14 = smov %s1111_s20 }
 0x283   : > { %s1516_s15 = smov %s1101_s17  ;;  %15 = sbr.rel (!%p13_p8) target bundleno = 3 (0x3), region = 75 }
 0x288   :  { %849 = vsyncpa [#allocation3], 1 }
 0x289   :  { %851 = vsyncpa [#allocation3 + $0x1], 1 }

</bundles_post_ra>
